<compile_context>
chip_gen: v6e
topology: v6e:2x2x1
jax: 0.10.0
libtpu: 0.0.40
codegen_flags: <defaults>
</compile_context>

<pallas_src>
import functools

import jax
import jax.numpy as jnp
from jax.experimental import pallas as pl
from jax.experimental.pallas import tpu as pltpu


def _fused_linear_kernel(x_ref, w_ref, o_ref):
    # x_ref: (TB, 128)  lane-dense packed activation tile (streams over the grid)
    # w_ref: (128, 128) block-diagonal fused weight (resident across grid steps)
    # o_ref: (TB, 128)  lane-dense packed output tile
    o_ref[...] = jnp.dot(
        x_ref[...], w_ref[...], preferred_element_type=jnp.float32
    ).astype(o_ref.dtype)


def _round_up(x, m):
    return (x + m - 1) // m * m


def prepare_toy_linear_weights(w1, w2, *, compute_dtype=None):
    """Fuse the two bias-free linears ONCE (hoisted out of the per-call path).

    w1: (n, m) torch nn.Linear weight layout (out_features, in_features)
    w2: (k, n)
    Returns (w_packed, pack):
      w_packed: (pack*m, pack*k) block-diagonal fused weight in (in, out) layout
      pack:     lane-packing factor (2 for m=k=64 -> full 128-lane rows)
    """
    n, m = w1.shape
    k, n1 = w2.shape
    assert n1 == n
    # x @ W1.T @ W2.T == x @ (W2 @ W1).T  (exact up to f32 reassociation)
    w_fused = (w2 @ w1).T  # (m, k), native (in, out) layout for the MXU
    if compute_dtype is not None:
        w_fused = w_fused.astype(compute_dtype)

    pack = 1
    if m == k and k < 128 and 128 % k == 0:
        pack = 128 // k
        eye = jnp.eye(pack, dtype=w_fused.dtype)
        w_fused = jnp.kron(eye, w_fused)  # block diagonal: (pack*m, pack*k)
    return w_fused, pack


def toy_linear_forward(x, w_packed, pack, *, block_rows=4096, out_dtype=None):
    """ToyLinearModel forward.

    x        : (B, m) activations (dtype defines compute/output dtype end-to-end).
    w_packed : fused block-diagonal weight from prepare_toy_linear_weights().
    pack     : lane-packing factor returned by prepare_toy_linear_weights().
    """
    B, M = x.shape
    PM, PK = w_packed.shape
    assert PM == pack * M
    K = PK // pack
    out_dtype = out_dtype or x.dtype

    # Pack `pack` consecutive batch rows into one lane-dense row.
    # (Contiguous row-major reshape -> free view; pad only for ragged odd tails.)
    b_pack = _round_up(B, pack)
    if b_pack != B:
        x = jnp.pad(x, ((0, b_pack - B), (0, 0)))
    rows = b_pack // pack
    x2 = x.reshape(rows, PM)

    # Batch tile (in packed rows): big enough to amortize per-step pipeline
    # overhead, capped at ~half the rows so large batches get >=2 grid steps
    # (v7x megacore), multiple of 8 sublanes. ~2 MiB/tile at the default cap,
    # safely under v5e's 16 MiB / v6e-v7x's 32 MiB scoped VMEM.
    if rows <= 8:
        tb = rows  # single block == full array dims (always a legal block shape)
    else:
        tb = min(block_rows, _round_up(pl.cdiv(rows, 2), 8))
    rows_pad = _round_up(rows, tb)
    if rows_pad != rows:
        # TODO(synk): replace tail padding with a masked store in the last block.
        x2 = jnp.pad(x2, ((0, rows_pad - rows), (0, 0)))
    grid = rows_pad // tb

    itemsize = x2.dtype.itemsize
    cost = pl.CostEstimate(
        flops=2 * rows_pad * PM * PK,
        transcendentals=0,
        bytes_accessed=(rows_pad * PM + rows_pad * PK) * itemsize
        + PM * PK * w_packed.dtype.itemsize,
    )

    out = pl.pallas_call(
        _fused_linear_kernel,
        out_shape=jax.ShapeDtypeStruct((rows_pad, PK), out_dtype),
        grid=(grid,),
        in_specs=[
            pl.BlockSpec((tb, PM), lambda i: (i, 0)),  # activation tile streams
            pl.BlockSpec((PM, PK), lambda i: (0, 0)),  # weight stays VMEM-resident
        ],
        out_specs=pl.BlockSpec((tb, PK), lambda i: (i, 0)),
        compiler_params=pltpu.CompilerParams(
            dimension_semantics=("parallel",),  # v7x: shard batch across 2 TCs
        ),
        cost_estimate=cost,
    )(x2, w_packed)

    # Unpack lane-dense rows back to (B, K). Slices are no-ops when no padding.
    out = out[:rows].reshape(b_pack, K)
    return out[:B]


if __name__ == "__main__":
    m, n, k = 64, 32, 64
    batch = 2

    key = jax.random.PRNGKey(0)
    kx, kw1, kw2 = jax.random.split(key, 3)

    # Deterministic synthetic parameters matching nn.Linear shapes (out, in).
    x = jax.random.normal(kx, (batch, m), dtype=jnp.float32)
    w1 = jax.random.normal(kw1, (n, m), dtype=jnp.float32) * 0.05  # linear1.weight
    w2 = jax.random.normal(kw2, (k, n), dtype=jnp.float32) * 0.05  # linear2.weight

    # Weight fusion hoisted out of the per-call path (done once).
    w_packed, pack = prepare_toy_linear_weights(w1, w2)
    w_packed = jax.block_until_ready(w_packed)

    fwd = jax.jit(functools.partial(toy_linear_forward, pack=pack))
    out = jax.block_until_ready(fwd(x, w_packed))

    # Reference: the unfused two-matmul forward in plain JAX (f32).
    ref = (x @ w1.T) @ w2.T
    assert out.shape == (batch, k)
    assert jnp.allclose(out, ref, atol=1e-4, rtol=1e-4)

    print("KERNEL_OK")
</pallas_src>

<mosaic_0001>
module attributes {stable_mosaic.version = 11 : i64} {
  func.func @_fused_linear_kernel(%arg0: i32, %arg1: memref<1x128xf32, #tpu.memory_space<vmem>>, %arg2: memref<128x128xf32, #tpu.memory_space<vmem>>, %arg3: memref<1x128xf32, #tpu.memory_space<vmem>>) attributes {dimension_semantics = [#tpu.dimension_semantics<parallel>], iteration_bounds = array<i64: 1>, scalar_prefetch = 0 : i64, scratch_operands = 0 : i64, tpu.core_type = #tpu.core_type<tc>, window_params = [{transform_indices = @transform_0, window_bounds = array<i64: 1, 128>}, {pipeline_mode = #tpu.pipeline_mode<synchronous>, transform_indices = @transform_1, window_bounds = array<i64: 128, 128>}, {transform_indices = @transform_2, window_bounds = array<i64: 1, 128>}]} {
    %c0 = arith.constant 0 : index
    %c0_0 = arith.constant 0 : index
    %0 = vector.load %arg1[%c0, %c0_0] : memref<1x128xf32, #tpu.memory_space<vmem>>, vector<1x128xf32>
    %c0_1 = arith.constant 0 : index
    %c0_2 = arith.constant 0 : index
    %1 = vector.load %arg2[%c0_1, %c0_2] : memref<128x128xf32, #tpu.memory_space<vmem>>, vector<128x128xf32>
    %cst = arith.constant dense<0.000000e+00> : vector<1x128xf32>
    %2 = tpu.matmul %0, %1, %cst {dimension_numbers = #tpu.dot_dimension_numbers<[1], [0], [0], [1], [0, 0, 1, 1], [], []>} : vector<1x128xf32>, vector<128x128xf32>, vector<1x128xf32> -> vector<1x128xf32>
    %c0_3 = arith.constant 0 : index
    %c0_4 = arith.constant 0 : index
    %3 = vector.load %arg3[%c0_3, %c0_4] : memref<1x128xf32, #tpu.memory_space<vmem>>, vector<1x128xf32>
    tpu.vector_store %arg3[%c0_3, %c0_4], %2 {strides = array<i32>} : memref<1x128xf32, #tpu.memory_space<vmem>>, vector<1x128xf32>,
    return
  }
  func.func @transform_0(%arg0: i32) -> (i32, i32) {
    %c0_i32 = arith.constant 0 : i32
    %c0_i32_0 = arith.constant 0 : i32
    return %arg0, %c0_i32 : i32, i32
  }
  func.func @transform_1(%arg0: i32) -> (i32, i32) {
    %c0_i32 = arith.constant 0 : i32
    %c0_i32_0 = arith.constant 0 : i32
    %c0_i32_1 = arith.constant 0 : i32
    return %c0_i32, %c0_i32_0 : i32, i32
  }
  func.func @transform_2(%arg0: i32) -> (i32, i32) {
    %c0_i32 = arith.constant 0 : i32
    %c0_i32_0 = arith.constant 0 : i32
    return %arg0, %c0_i32 : i32, i32
  }
}

</mosaic_0001>

<bundles_post_ra>
// kernel: toy_linear_forward.1
= control target key start
LH: loop header
LB: loop body
LE: loop exit
PB: predicated region body
PF: predicated region fallthrough
CT: control target
= control target key end

     0   :  { %7 = vsyncpa [#allocation3], 0  ;;  %s197_s9 = smov [#allocation2]   ;;  %s226_s0 = inlined_call_operand.vmem [shape: f32[1,128], index: 0, kind: input, shape index: {}]   ;;  %s227_s1 = inlined_call_operand.hbm [shape: f32[128,128], index: 1, kind: input, shape index: {}]   ;;  %s228_s2 = inlined_call_operand.vmem [shape: f32[1,128], index: 2, kind: output, shape index: {}]  }
   0x1   :  { %s15_s10 = sshll.u32 %s197_s9, 4  ;;  %s16_s10 = int_to_ptr.vmem [resolvable:$true] %s15_s10 }
   0x2   :  { %s183_s11 = scalar_lea.vmem %s16_s10, 2048  ;;  %p188_p1 = scmp.lt.s32.totalorder %s16_s10, %s16_s10 }
   0x3   :  { %p184_p0 = scmp.ne.s32.totalorder %s16_s10, %s183_s11  ;;  %p189_p2 = scmp.lt.s32.totalorder %s183_s11, %s183_s11 }
   0x5   :  { %p190_p3 = por %p189_p2, %p188_p1 }
   0x7   :  { %p191_p4 = pnand %p190_p3, %p184_p0 }
   0x9   :  { %194 = shalt.err (!%p191_p4)
}
   0xa   :  { %s198_s12 = smov 128   ;;  %s199_s13 = smov 8  }
   0xb   :  { %21 = dma.hbm_to_vmem [thread:$0]  %s227_s1, 2048, %s16_s10, [#allocation3], %s198_s12, %s198_s12, %s199_s13  }
   0xc   :  { %195 = dma.done.wait [#allocation3], 2048  }
   0xd   :  { %196 = vsyncadd [#allocation3], 4294965248  ;;  %v200_v0 = vmov 0.0   ;;  %vm201_vm0 = vmmov 0   ;;  %v41_v1 = vld [vmem:[#allocation2 + $0x78] sm:$0xff]  ;;  %v40_v2 = vld [vmem:[#allocation2 + $0x70] sm:$0xff] }
   0xe   :  { %135 = vmatprep.subr.mxu0 %v200_v0  ;;  %167 = vmatprep.mubr.msk.f32.mxu0 %vm201_vm0, %v200_v0  ;;  %v39_v3 = vld [vmem:[#allocation2 + $0x68] sm:$0xff]  ;;  %v38_v4 = vld [vmem:[#allocation2 + $0x60] sm:$0xff]  ;;  %v37_v5 = vld [vmem:[#allocation2 + $0x58] sm:$0xff] }
   0xf   :  { %136 = vmatpush3.msra.mxu0 %v41_v1  ;;  %v36_v6 = vld [vmem:[#allocation2 + $0x50] sm:$0xff]  ;;  %v35_v7 = vld [vmem:[#allocation2 + $0x48] sm:$0xff]  ;;  %v34_v8 = vld [vmem:[#allocation2 + $0x40] sm:$0xff] }
  0x10   :  { %137 = vmatprep.subr.mxu0 %v200_v0  ;;  %v33_v9 = vld [vmem:[#allocation2 + $0x38] sm:$0xff]  ;;  %v32_v10 = vld [vmem:[#allocation2 + $0x30] sm:$0xff]  ;;  %v31_v11 = vld [vmem:[#allocation2 + $0x28] sm:$0xff] }
  0x11   :  { %138 = vmatpush3.msra.mxu0 %v40_v2  ;;  %v30_v12 = vld [vmem:[#allocation2 + $0x20] sm:$0xff]  ;;  %v29_v13 = vld [vmem:[#allocation2 + $0x18] sm:$0xff]  ;;  %v28_v14 = vld [vmem:[#allocation2 + $0x10] sm:$0xff] }
  0x12   :  { %139 = vmatprep.subr.mxu0 %v200_v0  ;;  %v27_v15 = vld [vmem:[#allocation2 + $0x8] sm:$0xff]  ;;  %v26_v16 = vld [vmem:[#allocation2] sm:$0xff] }
  0x13   :  { %140 = vmatpush3.msra.mxu0 %v39_v3  ;;  %v25_v17 = vld [vmem:[%s226_s0] sm:$0x1] }
  0x14   :  { %141 = vmatprep.subr.mxu0 %v200_v0 }
  0x15   :  { %142 = vmatpush3.msra.mxu0 %v38_v4 }
  0x16   :  { %143 = vmatprep.subr.mxu0 %v200_v0 }
  0x17   :  { %144 = vmatpush3.msra.mxu0 %v37_v5 }
  0x18   :  { %145 = vmatprep.subr.mxu0 %v200_v0 }
  0x19   :  { %146 = vmatpush3.msra.mxu0 %v36_v6 }
  0x1a   :  { %147 = vmatprep.subr.mxu0 %v200_v0 }
  0x1b   :  { %148 = vmatpush3.msra.mxu0 %v35_v7 }
  0x1c   :  { %149 = vmatprep.subr.mxu0 %v200_v0 }
  0x1d   :  { %150 = vmatpush3.msra.mxu0 %v34_v8 }
  0x1e   :  { %151 = vmatprep.subr.mxu0 %v200_v0 }
  0x1f   :  { %152 = vmatpush3.msra.mxu0 %v33_v9 }
  0x20   :  { %153 = vmatprep.subr.mxu0 %v200_v0 }
  0x21   :  { %154 = vmatpush3.msra.mxu0 %v32_v10 }
  0x22   :  { %155 = vmatprep.subr.mxu0 %v200_v0 }
  0x23   :  { %156 = vmatpush3.msra.mxu0 %v31_v11 }
  0x24   :  { %157 = vmatprep.subr.mxu0 %v200_v0 }
  0x25   :  { %158 = vmatpush3.msra.mxu0 %v30_v12 }
  0x26   :  { %159 = vmatprep.subr.mxu0 %v200_v0 }
  0x27   :  { %160 = vmatpush3.msra.mxu0 %v29_v13 }
  0x28   :  { %161 = vmatprep.subr.mxu0 %v200_v0 }
  0x29   :  { %162 = vmatpush3.msra.mxu0 %v28_v14 }
  0x2a   :  { %163 = vmatprep.subr.mxu0 %v200_v0 }
  0x2b   :  { %164 = vmatpush3.msra.mxu0 %v27_v15 }
  0x2c   :  { %165 = vmatprep.subr.mxu0 %v200_v0 }
  0x2d   :  { %166 = vmatpush3.msra.mxu0 %v26_v16 }
  0x2e   :  { %168 = vmatmul.mubr.f32.vlgmr.msra.gmra.mxu0 %v25_v17 }
  0xee   :  { %v108_v18 = vpop.f32.mrf.mxu0 }
  0xef   :  { %112 = vst [vmem:[%s228_s2] sm:$0x1] %v108_v18 }
  0xf0   :  { %v169_v19 = vpop.f32.mrf.mxu0 }
  0xf1   :  { %117 = vsyncpa [#allocation3], 1 }

</bundles_post_ra>
